<compile_context>
chip_gen: v7x
topology: tpu7x:2x2x1
jax: 0.10.0
libtpu: 0.0.40
codegen_flags: <defaults>
</compile_context>

<pallas_src>
import jax
import jax.numpy as jnp
from jax import lax
from jax.experimental import pallas as pl
from jax.experimental.pallas import tpu as pltpu


LN_EPS = 1e-5
_MIB = 1024 * 1024
# Conservative per-batch-row VMEM footprint: double-buffered, lane-padded input
# and output tiles plus all f32 intermediates and headroom. Used to bound the
# batch tile so it always fits the scoped VMEM budget.
_ROW_VMEM_BYTES = 8 * 1024


def _round_up(x, m):
    return ((x + m - 1) // m) * m


def _vmem_capacity_bytes():
    """Physical VMEM of the local TPU (128 MiB on v5e/v6e, 64 MiB/TC on v7x)."""
    try:
        info = pltpu.get_tpu_info()
        cap = getattr(info, "vmem_capacity_bytes", None)
        if cap:
            return int(cap)
    except Exception:
        pass
    return 64 * _MIB  # conservative (v7x-sized) fallback


def _select_tiling(batch_size, tb_max):
    """Pick (tb, b_pad, n_tiles, vmem_limit_bytes) for the batch grid."""
    b8 = _round_up(max(int(batch_size), 1), 8)
    vmem_cap = _vmem_capacity_bytes()
    # 128 MiB parts (v5e/v6e): 64 MiB scoped budget; 64 MiB parts (v7x): 32 MiB.
    vmem_limit = 64 * _MIB if vmem_cap >= 100 * _MIB else 32 * _MIB
    tb_cap = max(8, min(tb_max, vmem_limit // _ROW_VMEM_BYTES))
    # At least 2 grid steps for mid/large batches so both v7x TensorCores get a
    # tile; on single-TC parts one extra ~0.35us step is noise.
    min_tiles = 2 if b8 >= 1024 else 1
    n_tiles = max(pl.cdiv(b8, tb_cap), min_tiles)
    # Spread rows evenly across tiles -> padding waste is at most 7 rows/tile.
    tb = _round_up(pl.cdiv(b8, n_tiles), 8)
    b_pad = n_tiles * tb
    return tb, b_pad, n_tiles, vmem_limit


def _layernorm_no_affine(x):
    # Single-pass LN: mean and mean-of-squares together, var clamped >= 0.
    mu = jnp.mean(x, axis=-1, keepdims=True)
    ms = jnp.mean(x * x, axis=-1, keepdims=True)
    var = jnp.maximum(ms - mu * mu, 0.0)
    return (x - mu) * lax.rsqrt(var + LN_EPS)


def decoder_kernel(zc_ref, wf_ref, wh_ref, wo_ref, b_ref, mean_ref, lat_ref):
    # ---- FirstL (fused expr_L + cond_L): one matmul over K = latent + cond ----
    h = jnp.dot(zc_ref[...], wf_ref[...], preferred_element_type=jnp.float32)
    h = _layernorm_no_affine(h)
    h = jnp.maximum(h, 0.0)
    # dec_latent written back in bf16 (halves writeback; 32-lane masked stores
    # are half as many bytes). Precision is re-expanded to f32 by the wrapper.
    lat_ref[...] = h.astype(lat_ref.dtype)

    # ---- HiddenL: Linear (no bias) -> LayerNorm -> ReLU ----
    x = jnp.dot(h.astype(wh_ref.dtype), wh_ref[...],
                preferred_element_type=jnp.float32)
    x = _layernorm_no_affine(x)
    x = jnp.maximum(x, 0.0)

    # ---- mean_decoder: Linear (+bias) -> Softmax(dim=-1) ----
    o = jnp.dot(x.astype(wo_ref.dtype), wo_ref[...],
                preferred_element_type=jnp.float32) + b_ref[...]
    m = jnp.max(o, axis=-1, keepdims=True)
    e = jnp.exp(o - m)
    denom = jnp.sum(e, axis=-1, keepdims=True)
    # Exact divide: downstream NB loss takes log(dec_mean_gamma), so rows must
    # sum to 1 beyond the ~5e-3 of the approx EUP reciprocal.
    mean_ref[...] = (e / denom).astype(mean_ref.dtype)


def decoder_forward(z, batch, params, *, tb_max=8192,
                    matmul_dtype=jnp.bfloat16,
                    latent_store_dtype=jnp.bfloat16,
                    mean_dtype=jnp.float32):
    """Full decoder forward in one gridded Pallas kernel.

    Returns (dec_mean_gamma, dec_latent) — matches recon_loss='nb'.
    """
    B = z.shape[0]
    # Concatenate and cast to the matmul dtype in the wrapper (fuses into the
    # XLA producer; halves the kernel's input DMA vs feeding f32).
    zc = jnp.concatenate([z, batch], axis=-1).astype(matmul_dtype)
    k_in = zc.shape[1]

    # Fuse FirstL's two weights; matmul weights stored bf16 (halved weight DMA,
    # fewer MXU passes). Accumulation stays f32.
    w_first = jnp.concatenate([params["w_expr"], params["w_cond"]],
                              axis=0).astype(matmul_dtype)
    w_hidden = params["w_hidden"].astype(matmul_dtype)
    w_out = params["w_out"].astype(matmul_dtype)
    b_out = params["b_out"].astype(jnp.float32)

    h1, h2, x_dim = w_first.shape[1], w_hidden.shape[1], w_out.shape[1]

    tb, b_pad, n_tiles, vmem_limit = _select_tiling(B, tb_max)
    if b_pad != B:
        zc = jnp.pad(zc, ((0, b_pad - B), (0, 0)))
    grid = (n_tiles,)

    out_shapes = (
        jax.ShapeDtypeStruct((b_pad, x_dim), mean_dtype),          # dec_mean_gamma
        jax.ShapeDtypeStruct((b_pad, h1), latent_store_dtype),     # dec_latent
    )

    grid_spec = pltpu.PrefetchScalarGridSpec(
        num_scalar_prefetch=0,
        grid=grid,
        in_specs=[
            pl.BlockSpec((tb, k_in), lambda i: (i, 0)),   # z_cat batch tile (bf16)
            pl.BlockSpec((k_in, h1), lambda i: (0, 0)),   # fused FirstL weight (resident)
            pl.BlockSpec((h1, h2), lambda i: (0, 0)),     # hidden weight (resident)
            pl.BlockSpec((h2, x_dim), lambda i: (0, 0)),  # output weight (resident)
            pl.BlockSpec((1, x_dim), lambda i: (0, 0)),   # output bias (resident)
        ],
        out_specs=(
            pl.BlockSpec((tb, x_dim), lambda i: (i, 0)),
            pl.BlockSpec((tb, h1), lambda i: (i, 0)),
        ),
    )

    itemsize = lambda d: jnp.dtype(d).itemsize
    flops = 2 * b_pad * (k_in * h1 + h1 * h2 + h2 * x_dim)
    bytes_accessed = (
        zc.size * itemsize(matmul_dtype)
        + (w_first.size + w_hidden.size + w_out.size) * itemsize(matmul_dtype)
        + b_out.size * 4
        + b_pad * (x_dim * itemsize(mean_dtype) + h1 * itemsize(latent_store_dtype))
    )
    cost = pl.CostEstimate(
        flops=flops,
        transcendentals=b_pad * (x_dim + 2),  # exp per logit + 2 rsqrt per row
        bytes_accessed=bytes_accessed,
    )

    fn = pl.pallas_call(
        decoder_kernel,
        out_shape=out_shapes,
        grid_spec=grid_spec,
        compiler_params=pltpu.CompilerParams(
            # Batch tiles are independent: shard the grid across TensorCores.
            dimension_semantics=("parallel",),
            # Generation-aware scoped budget (64 MiB on 128 MiB parts, 32 MiB
            # on v7x); tb was bounded above so the tiles fit under it.
            vmem_limit_bytes=vmem_limit,
        ),
        cost_estimate=cost,
    )
    dec_mean_gamma, dec_latent = fn(zc, w_first, w_hidden, w_out, b_out)
    if b_pad != B:
        dec_mean_gamma = dec_mean_gamma[:B]
        dec_latent = dec_latent[:B]
    # Re-expand dec_latent to f32 for the caller (HBM writeback stayed bf16).
    return dec_mean_gamma, dec_latent.astype(jnp.float32)


def init_params(key, latent_dim, h1, h2, x_dim, embedding_dim):
    ks = jax.random.split(key, 5)
    scale = 0.1
    return {
        # stored (in, out) = transposed PyTorch Linear weight
        "w_expr":   scale * jax.random.normal(ks[0], (latent_dim, h1), jnp.float32),
        "w_cond":   scale * jax.random.normal(ks[1], (embedding_dim, h1), jnp.float32),
        "w_hidden": scale * jax.random.normal(ks[2], (h1, h2), jnp.float32),
        "w_out":    scale * jax.random.normal(ks[3], (h2, x_dim), jnp.float32),
        "b_out":    scale * jax.random.normal(ks[4], (1, x_dim), jnp.float32),
    }


def reference_forward(z, batch, p, matmul_dtype=jnp.bfloat16):
    """Pure-JAX reference mirroring the kernel's bf16-operand / f32-accum matmuls."""
    zc = jnp.concatenate([z, batch], axis=-1).astype(matmul_dtype)
    wf = jnp.concatenate([p["w_expr"], p["w_cond"]], axis=0).astype(matmul_dtype)
    h = jnp.dot(zc, wf, preferred_element_type=jnp.float32)
    h = _layernorm_no_affine(h)
    h = jnp.maximum(h, 0.0)
    x = jnp.dot(h.astype(matmul_dtype), p["w_hidden"].astype(matmul_dtype),
                preferred_element_type=jnp.float32)
    x = _layernorm_no_affine(x)
    x = jnp.maximum(x, 0.0)
    o = jnp.dot(x.astype(matmul_dtype), p["w_out"].astype(matmul_dtype),
                preferred_element_type=jnp.float32) + p["b_out"]
    return jax.nn.softmax(o, axis=-1), h


def _check(z, batch, params, B, h1, x_dim):
    dec_mean_gamma, dec_latent = decoder_forward(z, batch, params)
    jax.block_until_ready((dec_mean_gamma, dec_latent))
    assert dec_mean_gamma.shape == (B, x_dim)
    assert dec_latent.shape == (B, h1)

    ref_mean, ref_lat = reference_forward(z, batch, params)
    # bf16 matmul operands + bf16 dec_latent writeback => loosened tolerances.
    assert jnp.allclose(dec_latent, ref_lat, atol=5e-2, rtol=2e-2)
    assert jnp.allclose(dec_mean_gamma, ref_mean, atol=2e-3, rtol=1e-2)
    # exact normalizer => softmax rows sum to 1 up to f32 rounding
    assert jnp.allclose(jnp.sum(dec_mean_gamma, axis=-1), 1.0, atol=1e-4)


if __name__ == "__main__":
    latent_dim, h1, h2, x_dim = 16, 32, 64, 128
    embedding_dim = 8

    key = jax.random.PRNGKey(0)
    kp, kz1, kb1, kz2, kb2 = jax.random.split(key, 5)
    params = init_params(kp, latent_dim, h1, h2, x_dim, embedding_dim)

    # Small-shape smoke test (single grid step).
    B = 8
    z = jax.random.normal(kz1, (B, latent_dim), jnp.float32)
    batch = jax.random.normal(kb1, (B, embedding_dim), jnp.float32)
    _check(z, batch, params, B, h1, x_dim)

    # Multi-tile path: >=2 grid steps + uneven batch (exercises padding logic).
    B2 = 1037
    z2 = jax.random.normal(kz2, (B2, latent_dim), jnp.float32)
    batch2 = jax.random.normal(kb2, (B2, embedding_dim), jnp.float32)
    _check(z2, batch2, params, B2, h1, x_dim)

    print("KERNEL_OK")
</pallas_src>

<mosaic_0001>
module attributes {stable_mosaic.version = 11 : i64} {
  func.func @decoder_kernel(%arg0: i32, %arg1: memref<8x24xbf16, #tpu.memory_space<vmem>>, %arg2: memref<24x32xbf16, #tpu.memory_space<vmem>>, %arg3: memref<32x64xbf16, #tpu.memory_space<vmem>>, %arg4: memref<64x128xbf16, #tpu.memory_space<vmem>>, %arg5: memref<1x128xf32, #tpu.memory_space<vmem>>, %arg6: memref<8x128xf32, #tpu.memory_space<vmem>>, %arg7: memref<8x32xbf16, #tpu.memory_space<vmem>>) attributes {dimension_semantics = [#tpu.dimension_semantics<parallel>], iteration_bounds = array<i64: 1>, scalar_prefetch = 0 : i64, scratch_operands = 0 : i64, tpu.core_type = #tpu.core_type<tc>, window_params = [{transform_indices = @transform_0, window_bounds = array<i64: 8, 24>}, {pipeline_mode = #tpu.pipeline_mode<synchronous>, transform_indices = @transform_1, window_bounds = array<i64: 24, 32>}, {pipeline_mode = #tpu.pipeline_mode<synchronous>, transform_indices = @transform_2, window_bounds = array<i64: 32, 64>}, {pipeline_mode = #tpu.pipeline_mode<synchronous>, transform_indices = @transform_3, window_bounds = array<i64: 64, 128>}, {pipeline_mode = #tpu.pipeline_mode<synchronous>, transform_indices = @transform_4, window_bounds = array<i64: 1, 128>}, {transform_indices = @transform_5, window_bounds = array<i64: 8, 128>}, {transform_indices = @transform_6, window_bounds = array<i64: 8, 32>}]} {
    %c0 = arith.constant 0 : index
    %c0_0 = arith.constant 0 : index
    %0 = vector.load %arg1[%c0, %c0_0] : memref<8x24xbf16, #tpu.memory_space<vmem>>, vector<8x24xbf16>
    %c0_1 = arith.constant 0 : index
    %c0_2 = arith.constant 0 : index
    %1 = vector.load %arg2[%c0_1, %c0_2] : memref<24x32xbf16, #tpu.memory_space<vmem>>, vector<24x32xbf16>
    %cst = arith.constant dense<0.000000e+00> : vector<8x32xf32>
    %2 = tpu.matmul %0, %1, %cst {dimension_numbers = #tpu.dot_dimension_numbers<[1], [0], [0], [1], [0, 0, 1, 1], [], []>} : vector<8x24xbf16>, vector<24x32xbf16>, vector<8x32xf32> -> vector<8x32xf32>
    %cst_3 = arith.constant dense<0.000000e+00> : vector<8xf32>
    %3 = vector.multi_reduction <add>, %2, %cst_3 [1] : vector<8x32xf32> to vector<8xf32>
    %4 = vector.shape_cast %3 : vector<8xf32> to vector<8x1xf32>
    %cst_4 = arith.constant 3.200000e+01 : f32
    %5 = vector.broadcast %cst_4 : f32 to vector<8x1xf32>
    %6 = arith.divf %4, %5 : vector<8x1xf32>
    %7 = arith.mulf %2, %2 : vector<8x32xf32>
    %cst_5 = arith.constant dense<0.000000e+00> : vector<8xf32>
    %8 = vector.multi_reduction <add>, %7, %cst_5 [1] : vector<8x32xf32> to vector<8xf32>
    %9 = vector.shape_cast %8 : vector<8xf32> to vector<8x1xf32>
    %cst_6 = arith.constant 3.200000e+01 : f32
    %10 = vector.broadcast %cst_6 : f32 to vector<8x1xf32>
    %11 = arith.divf %9, %10 : vector<8x1xf32>
    %12 = arith.mulf %6, %6 : vector<8x1xf32>
    %13 = arith.subf %11, %12 : vector<8x1xf32>
    %cst_7 = arith.constant 0.000000e+00 : f32
    %14 = vector.broadcast %cst_7 : f32 to vector<8x1xf32>
    %15 = arith.maximumf %13, %14 : vector<8x1xf32>
    %16 = vector.broadcast %6 : vector<8x1xf32> to vector<8x32xf32>
    %17 = arith.subf %2, %16 : vector<8x32xf32>
    %cst_8 = arith.constant 9.99999974E-6 : f32
    %18 = vector.broadcast %cst_8 : f32 to vector<8x1xf32>
    %19 = arith.addf %15, %18 : vector<8x1xf32>
    %20 = math.rsqrt %19 : vector<8x1xf32>
    %21 = vector.broadcast %20 : vector<8x1xf32> to vector<8x32xf32>
    %22 = arith.mulf %17, %21 : vector<8x32xf32>
    %cst_9 = arith.constant 0.000000e+00 : f32
    %23 = vector.broadcast %cst_9 : f32 to vector<8x32xf32>
    %24 = arith.maximumf %22, %23 : vector<8x32xf32>
    %25 = arith.truncf %24 : vector<8x32xf32> to vector<8x32xbf16>
    %c0_10 = arith.constant 0 : index
    %c0_11 = arith.constant 0 : index
    %26 = vector.load %arg7[%c0_10, %c0_11] : memref<8x32xbf16, #tpu.memory_space<vmem>>, vector<8x32xbf16>
    tpu.vector_store %arg7[%c0_10, %c0_11], %25 {strides = array<i32>} : memref<8x32xbf16, #tpu.memory_space<vmem>>, vector<8x32xbf16>,
    %27 = arith.truncf %24 : vector<8x32xf32> to vector<8x32xbf16>
    %c0_12 = arith.constant 0 : index
    %c0_13 = arith.constant 0 : index
    %28 = vector.load %arg3[%c0_12, %c0_13] : memref<32x64xbf16, #tpu.memory_space<vmem>>, vector<32x64xbf16>
    %cst_14 = arith.constant dense<0.000000e+00> : vector<8x64xf32>
    %29 = tpu.matmul %27, %28, %cst_14 {dimension_numbers = #tpu.dot_dimension_numbers<[1], [0], [0], [1], [0, 0, 1, 1], [], []>} : vector<8x32xbf16>, vector<32x64xbf16>, vector<8x64xf32> -> vector<8x64xf32>
    %cst_15 = arith.constant dense<0.000000e+00> : vector<8xf32>
    %30 = vector.multi_reduction <add>, %29, %cst_15 [1] : vector<8x64xf32> to vector<8xf32>
    %31 = vector.shape_cast %30 : vector<8xf32> to vector<8x1xf32>
    %cst_16 = arith.constant 6.400000e+01 : f32
    %32 = vector.broadcast %cst_16 : f32 to vector<8x1xf32>
    %33 = arith.divf %31, %32 : vector<8x1xf32>
    %34 = arith.mulf %29, %29 : vector<8x64xf32>
    %cst_17 = arith.constant dense<0.000000e+00> : vector<8xf32>
    %35 = vector.multi_reduction <add>, %34, %cst_17 [1] : vector<8x64xf32> to vector<8xf32>
    %36 = vector.shape_cast %35 : vector<8xf32> to vector<8x1xf32>
    %cst_18 = arith.constant 6.400000e+01 : f32
    %37 = vector.broadcast %cst_18 : f32 to vector<8x1xf32>
    %38 = arith.divf %36, %37 : vector<8x1xf32>
    %39 = arith.mulf %33, %33 : vector<8x1xf32>
    %40 = arith.subf %38, %39 : vector<8x1xf32>
    %cst_19 = arith.constant 0.000000e+00 : f32
    %41 = vector.broadcast %cst_19 : f32 to vector<8x1xf32>
    %42 = arith.maximumf %40, %41 : vector<8x1xf32>
    %43 = vector.broadcast %33 : vector<8x1xf32> to vector<8x64xf32>
    %44 = arith.subf %29, %43 : vector<8x64xf32>
    %cst_20 = arith.constant 9.99999974E-6 : f32
    %45 = vector.broadcast %cst_20 : f32 to vector<8x1xf32>
    %46 = arith.addf %42, %45 : vector<8x1xf32>
    %47 = math.rsqrt %46 : vector<8x1xf32>
    %48 = vector.broadcast %47 : vector<8x1xf32> to vector<8x64xf32>
    %49 = arith.mulf %44, %48 : vector<8x64xf32>
    %cst_21 = arith.constant 0.000000e+00 : f32
    %50 = vector.broadcast %cst_21 : f32 to vector<8x64xf32>
    %51 = arith.maximumf %49, %50 : vector<8x64xf32>
    %52 = arith.truncf %51 : vector<8x64xf32> to vector<8x64xbf16>
    %c0_22 = arith.constant 0 : index
    %c0_23 = arith.constant 0 : index
    %53 = vector.load %arg4[%c0_22, %c0_23] : memref<64x128xbf16, #tpu.memory_space<vmem>>, vector<64x128xbf16>
    %cst_24 = arith.constant dense<0.000000e+00> : vector<8x128xf32>
    %54 = tpu.matmul %52, %53, %cst_24 {dimension_numbers = #tpu.dot_dimension_numbers<[1], [0], [0], [1], [0, 0, 1, 1], [], []>} : vector<8x64xbf16>, vector<64x128xbf16>, vector<8x128xf32> -> vector<8x128xf32>
    %c0_25 = arith.constant 0 : index
    %c0_26 = arith.constant 0 : index
    %55 = vector.load %arg5[%c0_25, %c0_26] : memref<1x128xf32, #tpu.memory_space<vmem>>, vector<1x128xf32>
    %56 = vector.broadcast %55 : vector<1x128xf32> to vector<8x128xf32>
    %57 = arith.addf %54, %56 : vector<8x128xf32>
    %cst_27 = arith.constant dense<0xFF800000> : vector<8xf32>
    %58 = vector.multi_reduction <maximumf>, %57, %cst_27 [1] : vector<8x128xf32> to vector<8xf32>
    %59 = vector.shape_cast %58 : vector<8xf32> to vector<8x1xf32>
    %60 = vector.broadcast %59 : vector<8x1xf32> to vector<8x128xf32>
    %61 = arith.subf %57, %60 : vector<8x128xf32>
    %62 = math.exp %61 : vector<8x128xf32>
    %cst_28 = arith.constant dense<0.000000e+00> : vector<8xf32>
    %63 = vector.multi_reduction <add>, %62, %cst_28 [1] : vector<8x128xf32> to vector<8xf32>
    %64 = vector.shape_cast %63 : vector<8xf32> to vector<8x1xf32>
    %65 = vector.broadcast %64 : vector<8x1xf32> to vector<8x128xf32>
    %66 = arith.divf %62, %65 : vector<8x128xf32>
    %c0_29 = arith.constant 0 : index
    %c0_30 = arith.constant 0 : index
    %67 = vector.load %arg6[%c0_29, %c0_30] : memref<8x128xf32, #tpu.memory_space<vmem>>, vector<8x128xf32>
    tpu.vector_store %arg6[%c0_29, %c0_30], %66 {strides = array<i32>} : memref<8x128xf32, #tpu.memory_space<vmem>>, vector<8x128xf32>,
    return
  }
  func.func @transform_0(%arg0: i32) -> (i32, i32) {
    %c0_i32 = arith.constant 0 : i32
    %c0_i32_0 = arith.constant 0 : i32
    return %arg0, %c0_i32 : i32, i32
  }
  func.func @transform_1(%arg0: i32) -> (i32, i32) {
    %c0_i32 = arith.constant 0 : i32
    %c0_i32_0 = arith.constant 0 : i32
    %c0_i32_1 = arith.constant 0 : i32
    return %c0_i32, %c0_i32_0 : i32, i32
  }
  func.func @transform_2(%arg0: i32) -> (i32, i32) {
    %c0_i32 = arith.constant 0 : i32
    %c0_i32_0 = arith.constant 0 : i32
    %c0_i32_1 = arith.constant 0 : i32
    return %c0_i32, %c0_i32_0 : i32, i32
  }
  func.func @transform_3(%arg0: i32) -> (i32, i32) {
    %c0_i32 = arith.constant 0 : i32
    %c0_i32_0 = arith.constant 0 : i32
    %c0_i32_1 = arith.constant 0 : i32
    return %c0_i32, %c0_i32_0 : i32, i32
  }
  func.func @transform_4(%arg0: i32) -> (i32, i32) {
    %c0_i32 = arith.constant 0 : i32
    %c0_i32_0 = arith.constant 0 : i32
    %c0_i32_1 = arith.constant 0 : i32
    return %c0_i32, %c0_i32_0 : i32, i32
  }
  func.func @transform_5(%arg0: i32) -> (i32, i32) {
    %c0_i32 = arith.constant 0 : i32
    %c0_i32_0 = arith.constant 0 : i32
    return %arg0, %c0_i32 : i32, i32
  }
  func.func @transform_6(%arg0: i32) -> (i32, i32) {
    %c0_i32 = arith.constant 0 : i32
    %c0_i32_0 = arith.constant 0 : i32
    return %arg0, %c0_i32 : i32, i32
  }
}

</mosaic_0001>

<bundles_post_ra>
// kernel: tpu_custom_call.1
= control target key start
LH: loop header
LB: loop body
LE: loop exit
PB: predicated region body
PF: predicated region fallthrough
CT: control target
= control target key end

     0   :  { %12 = vsyncpa [#allocation3], 0  ;;  %s728_s0 = inlined_call_operand.hbm [shape: bf16[8,24], index: 0, kind: input, shape index: {}]   ;;  %s729_s1 = inlined_call_operand.hbm [shape: bf16[24,32], index: 1, kind: input, shape index: {}]   ;;  %s730_s2 = inlined_call_operand.hbm [shape: bf16[32,64], index: 2, kind: input, shape index: {}]   ;;  %s731_s3 = inlined_call_operand.hbm [shape: bf16[64,128], index: 3, kind: input, shape index: {}]   ;;  %s732_s4 = inlined_call_operand.vmem [shape: f32[1,128], index: 4, kind: input, shape index: {}]   ;;  %s733_s5 = inlined_call_operand.hbm [shape: f32[8,128], index: 5, kind: output, shape index: {0}]   ;;  %s734_s6 = inlined_call_operand.hbm [shape: bf16[8,32], index: 6, kind: output, shape index: {1}]  }
   0x1   :  { %13 = vsyncpa [#allocation6], 0 }
   0x2   :  { %14 = vsyncpa [#allocation9], 0 }
   0x3   :  { %15 = vsyncpa [#allocation4], 0 }
   0x4   :  { %16 = vsyncpa [#allocation12], 0  ;;  %s582_s21 = smov [#allocation5]   ;;  %s440_s25 = scalar_lea.hbm %s729_s1, 192 }
   0x5   :  { %s32_s22 = sshll.u32 %s582_s21, 4  ;;  %p441_p0 = scmp.ne.s32.totalorder %s729_s1, %s440_s25  ;;  %s33_s22 = int_to_ptr.vmem [resolvable:$true] %s32_s22 }
   0x6   :  { %p444_p1 = scmp.lt.u32.totalorder %s440_s25, %s729_s1 }
   0x8   :  { %p446_p2 = pnand %p444_p1, %p441_p0 }
   0xa   :  { %449 = shalt.err (!%p446_p2)
}
   0xb   :  { %s450_s30 = scalar_lea.vmem %s33_s22, 192  ;;  %p455_p4 = scmp.lt.s32.totalorder %s33_s22, %s33_s22 }
   0xc   :  { %p451_p3 = scmp.ne.s32.totalorder %s33_s22, %s450_s30  ;;  %p456_p5 = scmp.lt.s32.totalorder %s450_s30, %s450_s30 }
   0xe   :  { %p457_p6 = por %p456_p5, %p455_p4 }
  0x10   :  { %p458_p7 = pnand %p457_p6, %p451_p3 }
  0x12   :  { %461 = shalt.err (!%p458_p7)
}
  0x13   :  { %s583_s7 = smov 64   ;;  %s584_s8 = smov 4  }
  0x14   :  { %38 = dma.hbm_to_vmem [thread:$0]  %s729_s1, 192, %s33_s22, [#allocation6], %s583_s7, %s583_s7, %s584_s8  }
  0x15   :  { %s585_s11 = smov [#allocation2]   ;;  %s586_s13 = smov [#allocation7]  }
  0x16   :  { %s23_s12 = sshll.u32 %s585_s11, 4  ;;  %s44_s14 = sshll.u32 %s586_s13, 4  ;;  %s24_s12 = int_to_ptr.vmem [resolvable:$true] %s23_s12  ;;  %s45_s14 = int_to_ptr.vmem [resolvable:$true] %s44_s14 }
  0x17   :  { %s462_s17 = scalar_lea.hbm %s728_s0, 64 }
  0x18   :  { %p463_p8 = scmp.ne.s32.totalorder %s728_s0, %s462_s17  ;;  %p466_p9 = scmp.lt.u32.totalorder %s462_s17, %s728_s0 }
  0x1a   :  { %p468_p10 = pnand %p466_p9, %p463_p8 }
  0x1c   :  { %471 = shalt.err (!%p468_p10)
}
  0x1d   :  { %s472_s1 = scalar_lea.vmem %s24_s12, 64  ;;  %p477_p12 = scmp.lt.s32.totalorder %s24_s12, %s24_s12 }
  0x1e   :  { %p473_p11 = scmp.ne.s32.totalorder %s24_s12, %s472_s1  ;;  %p478_p13 = scmp.lt.s32.totalorder %s472_s1, %s472_s1 }
  0x20   :  { %p479_p0 = por %p478_p13, %p477_p12 }
  0x22   :  { %p480_p1 = pnand %p479_p0, %p473_p11 }
  0x24   :  { %483 = shalt.err (!%p480_p1)
}
  0x25   :  { %26 = dma.hbm_to_vmem [thread:$0]  %s728_s0, 64, %s24_s12, [#allocation3]  }
  0x26   :  { %s484_s26 = scalar_lea.hbm %s730_s2, 256 }
  0x27   :  { %p485_p2 = scmp.ne.s32.totalorder %s730_s2, %s484_s26  ;;  %p488_p3 = scmp.lt.u32.totalorder %s484_s26, %s730_s2 }
  0x29   :  { %p490_p4 = pnand %p488_p3, %p485_p2 }
  0x2b   :  { %493 = shalt.err (!%p490_p4)
}
  0x2c   :  { %s494_s9 = scalar_lea.vmem %s45_s14, 256  ;;  %p499_p6 = scmp.lt.s32.totalorder %s45_s14, %s45_s14 }
  0x2d   :  { %p495_p5 = scmp.ne.s32.totalorder %s45_s14, %s494_s9  ;;  %p500_p7 = scmp.lt.s32.totalorder %s494_s9, %s494_s9 }
  0x2f   :  { %p501_p8 = por %p500_p7, %p499_p6 }
  0x31   :  { %p502_p9 = pnand %p501_p8, %p495_p5 }
  0x33   :  { %505 = shalt.err (!%p502_p9)
}
  0x34   :  { %50 = dma.hbm_to_vmem [thread:$0]  %s730_s2, 256, %s45_s14, [#allocation6], %s583_s7, %s583_s7, %s584_s8  }
  0x35   :  { %s587_s11 = smov [#allocation8]   ;;  %s506_s16 = scalar_lea.hbm %s731_s3, 512 }
  0x36   :  { %s56_s12 = sshll.u32 %s587_s11, 4  ;;  %p507_p10 = scmp.ne.s32.totalorder %s731_s3, %s506_s16  ;;  %s57_s12 = int_to_ptr.vmem [resolvable:$true] %s56_s12 }
  0x37   :  { %p510_p11 = scmp.lt.u32.totalorder %s506_s16, %s731_s3 }
  0x39   :  { %p512_p12 = pnand %p510_p11, %p507_p10 }
  0x3b   :  { %515 = shalt.err (!%p512_p12)
}
  0x3c   :  { %s516_s21 = scalar_lea.vmem %s57_s12, 512  ;;  %p521_p0 = scmp.lt.s32.totalorder %s57_s12, %s57_s12 }
  0x3d   :  { %p517_p13 = scmp.ne.s32.totalorder %s57_s12, %s516_s21  ;;  %p522_p1 = scmp.lt.s32.totalorder %s516_s21, %s516_s21 }
  0x3f   :  { %p523_p2 = por %p522_p1, %p521_p0 }
  0x41   :  { %p524_p3 = pnand %p523_p2, %p517_p13 }
  0x43   :  { %527 = shalt.err (!%p524_p3)
}
  0x44   :  { %62 = dma.hbm_to_vmem [thread:$0]  %s731_s3, 512, %s57_s12, [#allocation9], %s583_s7, %s583_s7, %s584_s8  }
  0x45   :  { %572 = dma.done.wait [#allocation3], 64  }
  0x46   :  { %573 = vsyncadd [#allocation3], 4294967232 }
  0x47   :  { %574 = dma.done.wait [#allocation6], 448  }
  0x48   :  { %575 = vsyncadd [#allocation6], 4294966848 }
  0x49   :  { %576 = dma.done.wait [#allocation9], 512  }
  0x4a   :  { %577 = vsyncadd [#allocation9], 4294966784  ;;  %v588_v0 = vmov 0.0   ;;  %vm589_vm0 = vmmov 0   ;;  %v424_v1 = vld [vmem:[#allocation5] sm:$0xff]   ;;  %vm95_vm1 = vcmask 1043456  }
  0x4b   :  { %386 = vmatprep.subr.bf16.mxu1 %v588_v0  ;;  %390 = vmatprep.mubr.msk.bf16.mxu1 %vm589_vm0, %v588_v0  ;;  %v425_v2 = vld [vmem:[#allocation5 + $0x8] ss:$0 sps:$4 sm:$0xff]   ;;  %v78_v4 = vld [vmem:[#allocation2] sm:$0xf]  ;;  %vm91_vm2 = vcmask 195584   ;;  %vm139_vm3 = vcmask 261120  }
  0x4c   :  { %402 = vmatprep.subr.bf16.mxu0 %v588_v0  ;;  %410 = vmatprep.mubr.msk.bf16.mxu0 %vm589_vm0, %v588_v0  ;;  %v97_v3 = vsel %vm95_vm1, %v425_v2, 0  ;;  %v426_v12 = vld [vmem:[#allocation7] sm:$0xff]   ;;  %v427_v13 = vld [vmem:[#allocation7 + $0x8] sm:$0xff]   ;;  %vm159_vm4 = vcmask 257024   ;;  %vm220_vm5 = vcmask 523264   ;;  %v428_v34 = vld [vmem:[#allocation8] sm:$0xff]  }
  0x4d   :  { %387 = vmatpush3.bf16.msra.mxu1 %v424_v1  ;;  %403 = vmatpush3.bf16.msra.mxu0 %v428_v34  ;;  %v429_v35 = vld [vmem:[#allocation8 + $0x8] sm:$0xff]   ;;  %v430_v36 = vld [vmem:[#allocation8 + $0x10] sm:$0xff]   ;;  %v431_v37 = vld [vmem:[#allocation8 + $0x18] sm:$0xff]   ;;  %s590_s8 = smov [#allocation11]  }
  0x4e   :  { %388 = vmatprep.subr.bf16.mxu1 %v588_v0  ;;  %404 = vmatprep.subr.bf16.mxu0 %v588_v0  ;;  %v369_v51 = vld [vmem:[%s732_s4] ss:$0 sm:$0xff]  ;;  %s348_s1 = sshll.u32 %s590_s8, 4  ;;  %s349_s1 = int_to_ptr.vmem [resolvable:$true] %s348_s1 }
  0x4f   :  { %s528_s22 = scalar_lea.vmem %s349_s1, 64  ;;  %p533_p5 = scmp.lt.s32.totalorder %s349_s1, %s349_s1 }
  0x50   :  { %p529_p4 = scmp.ne.s32.totalorder %s349_s1, %s528_s22  ;;  %p534_p6 = scmp.lt.s32.totalorder %s528_s22, %s528_s22 }
  0x51   :  { %389 = vmatpush3.bf16.msra.mxu1 %v97_v3  ;;  %405 = vmatpush3.bf16.msra.mxu0 %v429_v35 }
  0x52   :  { %394 = vmatprep.subr.bf16.mxu1 %v588_v0  ;;  %406 = vmatprep.subr.bf16.mxu0 %v588_v0  ;;  %p535_p7 = por %p534_p6, %p533_p5 }
  0x54   :  { %391 = vmatmul.mubr.msk.bf16.vlgmr.msra.gmra.mrb[0].mxu1 %vm91_vm2, %v78_v4  ;;  %p536_p8 = pnand %p535_p7, %p529_p4 }
  0x55   :  { %398 = vmatprep.mubr.msk.bf16.mxu1 %vm589_vm0, %v588_v0  ;;  %395 = vmatpush3.bf16.msra.mxu1 %v426_v12 }
  0x56   :  { %396 = vmatprep.subr.bf16.mxu1 %v588_v0  ;;  %407 = vmatpush3.bf16.msra.mxu0 %v430_v36 }
  0x57   :  { %408 = vmatprep.subr.bf16.mxu0 %v588_v0 }
  0x59   :  { %397 = vmatpush3.bf16.msra.mxu1 %v427_v13 }
  0x5a   :  { %409 = vmatpush3.bf16.msra.mxu0 %v431_v37 }
 0x127   :  { %v133_v5 = vpop.f32.mrb[0].mxu1 }
 0x128   :  { %v392_v6 = vpop.f32.mrb[1].mxu1  ;;  %v140_v7 = vsel %vm139_vm3, %v133_v5, 0.0  ;;  %v145_v8 = vmul.f32 %v133_v5, %v133_v5 }
 0x129   :  { %141 = vadd.xlane.f32.xlu0 %v140_v7  ;;  %v136_v9 = vpop.f32.mrb[2].mxu1 }
 0x12a   :  { %v393_v10 = vpop.f32.mrb[3].mxu1  ;;  %v146_v11 = vsel %vm139_vm3, %v145_v8, 0.0 }
 0x12d   :  { %147 = vadd.xlane.f32.xlu0 %v146_v11 }
 0x1b6   :  { %v142_v14 = vpop.xlane.xlu0 %141 }
 0x1b7   :  { %v144_v15 = vmul.f32 0.03125, %v142_v14 }
 0x1b9   :  { %v150_v17 = vmul.f32 %v144_v15, %v144_v15  ;;  %v153_v22 = vsub.f32 %v133_v5, %v144_v15 }
 0x1ba   :  { %v148_v16 = vpop.xlane.xlu0 %147 }
 0x1bb   :  { %v149_v18 = vmul.f32 0.03125, %v148_v16 }
 0x1bd   :  { %v151_v19 = vsub.f32 %v149_v18, %v150_v17 }
 0x1bf   :  { %v152_v20 = vmax.f32 %v151_v19, 0.0 }
 0x1c1   :  { %v154_v21 = vadd.f32 1e-05, %v152_v20 }
 0x1c3   :  { %432 = vrsqrt.f32 %v154_v21 }
 0x1cd   :  { %v433_v23 = vpop.eup %432 }
 0x1ce   :  { %v156_v24 = vmul.f32 %v433_v23, %v153_v22 }
 0x1d0   :  { %v157_v25 = vmax.f32 %v156_v24, 0.0 }
 0x1d2   :  { %v158_v26 = vpack.c.bf16 %v157_v25, %v157_v25 }
 0x1d4   :  { %399 = vmatmul.mubr.msk.bf16.vlgmr.msra.gmra.mrb[4].mxu1 %vm139_vm3, %v158_v26  ;;  %160 = vst.msk [vmem:[#allocation11] sm:$0xf] %vm159_vm4, %v158_v26 }
 0x2a7   :  { %v214_v27 = vpop.f32.mrb[4].mxu1 }
 0x2a8   :  { %v400_v28 = vpop.f32.mrb[5].mxu1  ;;  %v221_v29 = vsel %vm220_vm5, %v214_v27, 0.0  ;;  %v226_v30 = vmul.f32 %v214_v27, %v214_v27 }
 0x2a9   :  { %222 = vadd.xlane.f32.xlu1 %v221_v29  ;;  %v217_v31 = vpop.f32.mrb[6].mxu1 }
 0x2aa   :  { %v401_v32 = vpop.f32.mrb[7].mxu1  ;;  %v227_v33 = vsel %vm220_vm5, %v226_v30, 0.0 }
 0x2ad   :  { %228 = vadd.xlane.f32.xlu1 %v227_v33 }
 0x336   :  { %v223_v38 = vpop.xlane.xlu1 %222 }
 0x337   :  { %v225_v39 = vmul.f32 0.015625, %v223_v38 }
 0x339   :  { %v231_v41 = vmul.f32 %v225_v39, %v225_v39  ;;  %v234_v46 = vsub.f32 %v214_v27, %v225_v39 }
 0x33a   :  { %v229_v40 = vpop.xlane.xlu1 %228 }
 0x33b   :  { %v230_v42 = vmul.f32 0.015625, %v229_v40 }
 0x33d   :  { %v232_v43 = vsub.f32 %v230_v42, %v231_v41 }
 0x33f   :  { %v233_v44 = vmax.f32 %v232_v43, 0.0 }
 0x341   :  { %v235_v45 = vadd.f32 1e-05, %v233_v44 }
 0x343   :  { %434 = vrsqrt.f32 %v235_v45 }
 0x34d   :  { %v435_v47 = vpop.eup %434 }
 0x34e   :  { %v237_v48 = vmul.f32 %v435_v47, %v234_v46 }
 0x350   :  { %v238_v49 = vmax.f32 %v237_v48, 0.0 }
 0x352   :  { %v239_v50 = vpack.c.bf16 %v238_v49, %v238_v49 }
 0x354   :  { %411 = vmatmul.mubr.msk.bf16.vlgmr.msra.gmra.mrb[0].mxu0 %vm220_vm5, %v239_v50 }
 0x427   :  { %v316_v52 = vpop.f32.mrb[0].mxu0 }
 0x428   :  { %v317_v53 = vadd.f32 %v369_v51, %v316_v52  ;;  %v412_v54 = vpop.f32.mrb[1].mxu0 }
 0x429   :  { %v319_v55 = vpop.f32.mrb[2].mxu0 }
 0x42a   :  { %322 = vmax.xlane.f32.xlu0 %v317_v53  ;;  %v413_v56 = vpop.f32.mrb[3].mxu0 }
 0x4b7   :  { %v323_v57 = vpop.xlane.xlu0 %322 }
 0x4b8   :  { %v324_v58 = vsub.f32 %v317_v53, %v323_v57 }
 0x4ba   :  { %v325_v59 = vmul.f32 1.442695, %v324_v58 }
 0x4bc   :  { %436 = vpow2.f32 %v325_v59 }
 0x4c6   :  { %v437_v60 = vpop.eup %436 }
 0x4c7   :  { %327 = vadd.xlane.f32.xlu1 %v437_v60 }
 0x4c8   :  { %539 = shalt.err (!%p536_p8)
}
 0x4c9   :  { %s540_s24 = scalar_lea.hbm %s734_s6, 64 }
 0x4ca   :  { %p541_p9 = scmp.ne.s32.totalorder %s734_s6, %s540_s24  ;;  %p544_p10 = scmp.lt.u32.totalorder %s540_s24, %s734_s6 }
 0x4cc   :  { %p546_p11 = pnand %p544_p10, %p541_p9 }
 0x4ce   :  { %549 = shalt.err (!%p546_p11)
}
 0x4cf   :  { %351 = dma.vmem_to_hbm [thread:$0]  %s349_s1, 64, %s734_s6, [#allocation12]  }
 0x4d0   :  { %s591_s9 = smov [#allocation10]  }
 0x4d1   :  { %s338_s0 = sshll.u32 %s591_s9, 4  ;;  %s339_s0 = int_to_ptr.vmem [resolvable:$true] %s338_s0 }
 0x4d2   :  { %s550_s10 = scalar_lea.vmem %s339_s0, 128  ;;  %p555_p13 = scmp.lt.s32.totalorder %s339_s0, %s339_s0 }
 0x4d3   :  { %p551_p12 = scmp.ne.s32.totalorder %s339_s0, %s550_s10  ;;  %p556_p0 = scmp.lt.s32.totalorder %s550_s10, %s550_s10 }
 0x4d5   :  { %p557_p1 = por %p556_p0, %p555_p13 }
 0x4d7   :  { %p558_p2 = pnand %p557_p1, %p551_p12 }
 0x554   :  { %v328_v61 = vpop.xlane.xlu1 %327 }
 0x555   :  { %438 = vrcp.f32 %v328_v61 }
 0x55f   :  { %v439_v62 = vpop.eup %438 }
 0x560   :  { %v330_v63 = vmul.f32 %v439_v62, %v437_v60 }
 0x562   :  { %331 = vst [vmem:[#allocation10] sm:$0xff] %v330_v63 }
 0x563   :  { %561 = shalt.err (!%p558_p2)
}
 0x564   :  { %s562_s13 = scalar_lea.hbm %s733_s5, 128 }
 0x565   :  { %p563_p3 = scmp.ne.s32.totalorder %s733_s5, %s562_s13  ;;  %p566_p4 = scmp.lt.u32.totalorder %s562_s13, %s733_s5 }
 0x567   :  { %p568_p5 = pnand %p566_p4, %p563_p3 }
 0x569   :  { %571 = shalt.err (!%p568_p5)
}
 0x56a   :  { %341 = dma.vmem_to_hbm [thread:$0]  %s339_s0, 128, %s733_s5, [#allocation4]  }
 0x56b   :  { %578 = dma.done.wait [#allocation4], 128  }
 0x56c   :  { %579 = vsyncadd [#allocation4], 4294967168 }
 0x56d   :  { %580 = dma.done.wait [#allocation12], 64  }
 0x56e   :  { %581 = vsyncadd [#allocation12], 4294967232 }
 0x56f   :  { %358 = vsyncpa [#allocation3], 1 }
 0x570   :  { %359 = vsyncpa [#allocation6], 1 }
 0x571   :  { %360 = vsyncpa [#allocation9], 1 }
 0x572   :  { %361 = vsyncpa [#allocation4], 1 }
 0x573   :  { %362 = vsyncpa [#allocation12], 1 }

</bundles_post_ra>
